<compile_context>
chip_gen: v7x
topology: tpu7x:2x2x1
jax: 0.10.0
libtpu: 0.0.40
codegen_flags: <defaults>
</compile_context>

<pallas_src>
import functools

import jax
import jax.numpy as jnp
from jax.experimental import pallas as pl
from jax.experimental.pallas import tpu as pltpu


def _round_up(a, m):
    return (a + m - 1) // m * m


def _vmem_capacity_bytes():
    try:
        return int(pltpu.get_tpu_info().vmem_capacity_bytes)
    except Exception:
        return 64 * 1024 * 1024  # conservative: v7x per-TensorCore VMEM


def _layernorm_rows(x_ref, *, inv_d, eps, d_true):
    """f32 row-normalized tile; exact even when the block has padded columns."""
    x = x_ref[...].astype(jnp.float32)
    mean = jnp.sum(x, axis=-1, keepdims=True) * inv_d
    centered = x - mean
    if d_true != x.shape[-1]:
        # Padded columns: zero them so the (two-pass) variance and the matmul
        # contraction only see the true D columns.
        col = jax.lax.broadcasted_iota(jnp.int32, x.shape, x.ndim - 1)
        centered = jnp.where(col < d_true, centered, 0.0)
    var = jnp.sum(centered * centered, axis=-1, keepdims=True) * inv_d
    return centered * jax.lax.rsqrt(var + eps)          # rsqrt -> EUP


def prenorm_resident_kernel(x_ref, w_ref, b_ref, o_ref, *, inv_d, eps, d_true):
    # x_ref: (tm, Dp) row tile; w_ref: (Dp, Hp) folded bf16 weight (VMEM-resident,
    # constant block index); b_ref: (1, Hp) folded f32 bias; o_ref: (tm, Hp).
    xn = _layernorm_rows(x_ref, inv_d=inv_d, eps=eps, d_true=d_true)
    acc = jnp.dot(xn.astype(w_ref.dtype), w_ref[...],
                  preferred_element_type=jnp.float32)
    o_ref[...] = (acc + b_ref[...]).astype(o_ref.dtype)


def prenorm_tiled_kernel(x_ref, w_ref, b_ref, o_ref, xn_ref, *, inv_d, eps, d_true):
    # Large-H fallback.  xn_ref: (tm, Dp) VMEM scratch holding the normalized,
    # already MXU-dtype row tile; computed once per row tile (j == 0) and reused
    # for every output-column tile j.
    @pl.when(pl.program_id(1) == 0)
    def _():
        xn = _layernorm_rows(x_ref, inv_d=inv_d, eps=eps, d_true=d_true)
        xn_ref[...] = xn.astype(xn_ref.dtype)

    acc = jnp.dot(xn_ref[...], w_ref[...], preferred_element_type=jnp.float32)
    o_ref[...] = (acc + b_ref[...]).astype(o_ref.dtype)


def prenorm_forward(x, gamma, beta, w, wb, *, tm=None, tn=256, eps=1e-5,
                    mxu_dtype=jnp.bfloat16, force_tiled=False):
    """Fused PreNorm: Linear(LayerNorm(dim)(x)).  x: (B, N, D) -> (B, N, H)."""
    B, N, D = x.shape
    H = w.shape[1]
    R = B * N
    out_dtype = x.dtype

    # Fold the LayerNorm affine into the linear layer (exact algebra, f32):
    #   (xn*gamma + beta) @ W + wb == xn @ (gamma[:,None]*W) + (beta @ W + wb)
    wf = w.astype(jnp.float32)
    w_fold = (gamma.astype(jnp.float32)[:, None] * wf).astype(mxu_dtype)
    b_fold = beta.astype(jnp.float32) @ wf + wb.astype(jnp.float32)   # (H,) f32

    # Pad ONLY when unaligned (common transformer dims skip this entirely).
    # Rows are never padded: OOB rows of the last block only write OOB output
    # rows, which the masked store drops.
    Dp = D if D % 128 == 0 else _round_up(D, 128)
    Hp = H if H % 128 == 0 else _round_up(H, 128)

    x2 = x.reshape(R, D)
    if Dp != D:
        x2 = jnp.pad(x2, ((0, 0), (0, Dp - D)))
    w2 = w_fold if (Dp == D and Hp == H) else jnp.pad(
        w_fold, ((0, Dp - D), (0, Hp - H)))
    b2 = b_fold.reshape(1, H)
    if Hp != H:
        b2 = jnp.pad(b2, ((0, 0), (0, Hp - H)))

    x_item = x2.dtype.itemsize
    w_item = w2.dtype.itemsize
    b_item = b2.dtype.itemsize
    o_item = jnp.dtype(out_dtype).itemsize

    cap = _vmem_capacity_bytes()
    cap_limit = max(32 << 20, min(int(cap * 0.85), cap - (8 << 20)))

    # Row tile: bigger on 128-MiB parts (v5e/v6e), 256 on v7x; multiple of 8.
    if tm is None:
        tm = 512 if cap >= (100 << 20) else 256
    tm = max(8, min(_round_up(tm, 8), _round_up(R, 8)))

    # Column tile for the fallback path: multiple of 128 that divides Hp.
    m128 = Hp // 128
    k = max(1, min(max(tn, 128) // 128, m128))
    while m128 % k:
        k -= 1
    tn_eff = 128 * k

    def need_resident(tm_):
        return (2 * tm_ * Dp * x_item        # x double buffer
                + 2 * Dp * Hp * w_item       # resident weight (2 bufs)
                + 2 * Hp * b_item            # bias
                + 2 * tm_ * Hp * o_item      # out double buffer
                + int(2.5 * tm_ * Dp * 4)    # f32 x / centered / bf16 xn temps
                + tm_ * Hp * 4)              # f32 accumulator

    def need_tiled(tm_):
        return (2 * tm_ * Dp * x_item
                + 2 * Dp * tn_eff * w_item
                + 2 * tn_eff * b_item
                + 2 * tm_ * tn_eff * o_item
                + tm_ * Dp * w_item          # xn scratch
                + int(2.5 * tm_ * Dp * 4)
                + tm_ * tn_eff * 4)

    use_resident = (not force_tiled) and (2 * Dp * Hp * w_item <= cap_limit // 2)
    need_fn = need_resident if use_resident else need_tiled

    # Shrink tm if the working set would overflow the per-core VMEM budget
    # (e.g. very large D on v7x's 64 MiB).
    while tm > 8 and need_fn(tm) > cap_limit:
        tm = max(8, _round_up(tm // 2, 8))

    vmem_limit = int(min(cap_limit, max(32 << 20, int(1.25 * need_fn(tm)))))
    n_row_tiles = pl.cdiv(R, tm)

    if use_resident:
        cost = pl.CostEstimate(
            flops=2 * R * D * H,
            transcendentals=R,
            bytes_accessed=(R * D * x_item + D * H * w_item + H * b_item
                            + R * H * o_item))
        kernel = functools.partial(prenorm_resident_kernel,
                                   inv_d=1.0 / D, eps=eps, d_true=D)
        out = pl.pallas_call(
            kernel,
            out_shape=jax.ShapeDtypeStruct((R, Hp), out_dtype),
            grid_spec=pltpu.PrefetchScalarGridSpec(
                num_scalar_prefetch=0,
                grid=(n_row_tiles,),
                in_specs=[
                    pl.BlockSpec((tm, Dp), lambda i: (i, 0)),   # x row tile
                    pl.BlockSpec((Dp, Hp), lambda i: (0, 0)),   # resident weight
                    pl.BlockSpec((1, Hp), lambda i: (0, 0)),    # resident bias
                ],
                out_specs=pl.BlockSpec((tm, Hp), lambda i: (i, 0)),
            ),
            compiler_params=pltpu.CompilerParams(
                dimension_semantics=("parallel",),   # 2-TC sharding on v7x
                vmem_limit_bytes=vmem_limit,
            ),
            cost_estimate=cost,
        )(x2, w2, b2)
    else:
        cost = pl.CostEstimate(
            flops=2 * R * D * H,
            transcendentals=R,
            bytes_accessed=(R * D * x_item + n_row_tiles * D * H * w_item
                            + H * b_item + R * H * o_item))
        kernel = functools.partial(prenorm_tiled_kernel,
                                   inv_d=1.0 / D, eps=eps, d_true=D)
        out = pl.pallas_call(
            kernel,
            out_shape=jax.ShapeDtypeStruct((R, Hp), out_dtype),
            grid_spec=pltpu.PrefetchScalarGridSpec(
                num_scalar_prefetch=0,
                grid=(n_row_tiles, Hp // tn_eff),
                in_specs=[
                    pl.BlockSpec((tm, Dp), lambda i, j: (i, 0)),     # x (reused over j)
                    pl.BlockSpec((Dp, tn_eff), lambda i, j: (0, j)), # weight column tile
                    pl.BlockSpec((1, tn_eff), lambda i, j: (0, j)),  # bias column tile
                ],
                out_specs=pl.BlockSpec((tm, tn_eff), lambda i, j: (i, j)),
                scratch_shapes=[pltpu.VMEM((tm, Dp), w2.dtype)],     # cached xn
            ),
            compiler_params=pltpu.CompilerParams(
                dimension_semantics=("parallel", "arbitrary"),
                vmem_limit_bytes=vmem_limit,
            ),
            cost_estimate=cost,
        )(x2, w2, b2)

    if Hp != H:
        out = out[:, :H]
    return out.reshape(B, N, H)


def prenorm_reference(x, gamma, beta, w, wb, eps=1e-5):
    xf = x.astype(jnp.float32)
    mean = jnp.mean(xf, axis=-1, keepdims=True)
    var = jnp.mean((xf - mean) ** 2, axis=-1, keepdims=True)
    y = (xf - mean) * jax.lax.rsqrt(var + eps) * gamma + beta
    return (y @ w.astype(jnp.float32) + wb).astype(x.dtype)


if __name__ == "__main__":
    B, N, D, H = 2, 8, 32, 32
    key = jax.random.PRNGKey(0)
    kx, kg, kb, kw, kwb = jax.random.split(key, 5)

    x = jax.random.normal(kx, (B, N, D), dtype=jnp.float32)
    # nn.LayerNorm defaults weight=1, bias=0 — perturb deterministically so the
    # (folded) affine path is actually exercised.
    gamma = 1.0 + 0.1 * jax.random.normal(kg, (D,), dtype=jnp.float32)
    beta = 0.1 * jax.random.normal(kb, (D,), dtype=jnp.float32)
    # fn = Linear(D, H), deterministic init.
    w = jax.random.normal(kw, (D, H), dtype=jnp.float32) / jnp.sqrt(D)
    wb = 0.1 * jax.random.normal(kwb, (H,), dtype=jnp.float32)

    ref = prenorm_reference(x, gamma, beta, w, wb)

    # Weight fold + (conditional) padding fuse with the kernel under jit.
    fwd = jax.jit(prenorm_forward)
    out = jax.block_until_ready(fwd(x, gamma, beta, w, wb))
    assert out.shape == (B, N, H)
    # bf16 MXU path -> compare with a bf16-appropriate tolerance.
    assert jnp.allclose(out, ref, atol=3e-2, rtol=3e-2), "resident path mismatch"

    # Also exercise the large-H fallback (2-D grid + cached-xn scratch).
    fwd_tiled = jax.jit(functools.partial(prenorm_forward, force_tiled=True))
    out2 = jax.block_until_ready(fwd_tiled(x, gamma, beta, w, wb))
    assert out2.shape == (B, N, H)
    assert jnp.allclose(out2, ref, atol=3e-2, rtol=3e-2), "tiled path mismatch"

    print("KERNEL_OK")
</pallas_src>

<mosaic_0001>
module attributes {stable_mosaic.version = 11 : i64} {
  func.func @prenorm_resident_kernel(%arg0: i32, %arg1: memref<16x128xf32, #tpu.memory_space<vmem>>, %arg2: memref<128x128xbf16, #tpu.memory_space<vmem>>, %arg3: memref<1x128xf32, #tpu.memory_space<vmem>>, %arg4: memref<16x128xf32, #tpu.memory_space<vmem>>) attributes {dimension_semantics = [#tpu.dimension_semantics<parallel>], iteration_bounds = array<i64: 1>, scalar_prefetch = 0 : i64, scratch_operands = 0 : i64, tpu.core_type = #tpu.core_type<tc>, window_params = [{transform_indices = @transform_0, window_bounds = array<i64: 16, 128>}, {pipeline_mode = #tpu.pipeline_mode<synchronous>, transform_indices = @transform_1, window_bounds = array<i64: 128, 128>}, {pipeline_mode = #tpu.pipeline_mode<synchronous>, transform_indices = @transform_2, window_bounds = array<i64: 1, 128>}, {transform_indices = @transform_3, window_bounds = array<i64: 16, 128>}]} {
    %c0 = arith.constant 0 : index
    %c0_0 = arith.constant 0 : index
    %0 = vector.load %arg1[%c0, %c0_0] : memref<16x128xf32, #tpu.memory_space<vmem>>, vector<16x128xf32>
    %cst = arith.constant dense<0.000000e+00> : vector<16xf32>
    %1 = vector.multi_reduction <add>, %0, %cst [1] : vector<16x128xf32> to vector<16xf32>
    %2 = vector.shape_cast %1 : vector<16xf32> to vector<16x1xf32>
    %cst_1 = arith.constant 3.125000e-02 : f32
    %3 = vector.broadcast %cst_1 : f32 to vector<16x1xf32>
    %4 = arith.mulf %2, %3 : vector<16x1xf32>
    %5 = vector.broadcast %4 : vector<16x1xf32> to vector<16x128xf32>
    %6 = arith.subf %0, %5 : vector<16x128xf32>
    %7 = tpu.iota {dimensions = array<i32: 1>} : vector<16x128xi32>
    %c32_i32 = arith.constant 32 : i32
    %8 = vector.broadcast %c32_i32 : i32 to vector<16x128xi32>
    %9 = arith.cmpi slt, %7, %8 : vector<16x128xi32>
    %cst_2 = arith.constant 0.000000e+00 : f32
    %10 = vector.broadcast %cst_2 : f32 to vector<16x128xf32>
    %11 = arith.select %9, %6, %10 : vector<16x128xi1>, vector<16x128xf32>
    %12 = arith.mulf %11, %11 : vector<16x128xf32>
    %cst_3 = arith.constant dense<0.000000e+00> : vector<16xf32>
    %13 = vector.multi_reduction <add>, %12, %cst_3 [1] : vector<16x128xf32> to vector<16xf32>
    %14 = vector.shape_cast %13 : vector<16xf32> to vector<16x1xf32>
    %cst_4 = arith.constant 3.125000e-02 : f32
    %15 = vector.broadcast %cst_4 : f32 to vector<16x1xf32>
    %16 = arith.mulf %14, %15 : vector<16x1xf32>
    %cst_5 = arith.constant 9.99999974E-6 : f32
    %17 = vector.broadcast %cst_5 : f32 to vector<16x1xf32>
    %18 = arith.addf %16, %17 : vector<16x1xf32>
    %19 = math.rsqrt %18 : vector<16x1xf32>
    %20 = vector.broadcast %19 : vector<16x1xf32> to vector<16x128xf32>
    %21 = arith.mulf %11, %20 : vector<16x128xf32>
    %22 = arith.truncf %21 : vector<16x128xf32> to vector<16x128xbf16>
    %c0_6 = arith.constant 0 : index
    %c0_7 = arith.constant 0 : index
    %23 = vector.load %arg2[%c0_6, %c0_7] : memref<128x128xbf16, #tpu.memory_space<vmem>>, vector<128x128xbf16>
    %cst_8 = arith.constant dense<0.000000e+00> : vector<16x128xf32>
    %24 = tpu.matmul %22, %23, %cst_8 {dimension_numbers = #tpu.dot_dimension_numbers<[1], [0], [0], [1], [0, 0, 1, 1], [], []>} : vector<16x128xbf16>, vector<128x128xbf16>, vector<16x128xf32> -> vector<16x128xf32>
    %c0_9 = arith.constant 0 : index
    %c0_10 = arith.constant 0 : index
    %25 = vector.load %arg3[%c0_9, %c0_10] : memref<1x128xf32, #tpu.memory_space<vmem>>, vector<1x128xf32>
    %26 = vector.broadcast %25 : vector<1x128xf32> to vector<16x128xf32>
    %27 = arith.addf %24, %26 : vector<16x128xf32>
    %c0_11 = arith.constant 0 : index
    %c0_12 = arith.constant 0 : index
    %28 = vector.load %arg4[%c0_11, %c0_12] : memref<16x128xf32, #tpu.memory_space<vmem>>, vector<16x128xf32>
    tpu.vector_store %arg4[%c0_11, %c0_12], %27 {strides = array<i32>} : memref<16x128xf32, #tpu.memory_space<vmem>>, vector<16x128xf32>,
    return
  }
  func.func @transform_0(%arg0: i32) -> (i32, i32) {
    %c0_i32 = arith.constant 0 : i32
    %c0_i32_0 = arith.constant 0 : i32
    return %arg0, %c0_i32 : i32, i32
  }
  func.func @transform_1(%arg0: i32) -> (i32, i32) {
    %c0_i32 = arith.constant 0 : i32
    %c0_i32_0 = arith.constant 0 : i32
    %c0_i32_1 = arith.constant 0 : i32
    return %c0_i32, %c0_i32_0 : i32, i32
  }
  func.func @transform_2(%arg0: i32) -> (i32, i32) {
    %c0_i32 = arith.constant 0 : i32
    %c0_i32_0 = arith.constant 0 : i32
    %c0_i32_1 = arith.constant 0 : i32
    return %c0_i32, %c0_i32_0 : i32, i32
  }
  func.func @transform_3(%arg0: i32) -> (i32, i32) {
    %c0_i32 = arith.constant 0 : i32
    %c0_i32_0 = arith.constant 0 : i32
    return %arg0, %c0_i32 : i32, i32
  }
}

</mosaic_0001>

<bundles_post_ra>
// kernel: prenorm_forward.1
= control target key start
LH: loop header
LB: loop body
LE: loop exit
PB: predicated region body
PF: predicated region fallthrough
CT: control target
= control target key end

     0   :  { %v215_v2 = vmov 0.0   ;;  %v25_v5 = vlaneseq  ;;  %vm216_vm1 = vmmov 0   ;;  %s276_s0 = inlined_call_operand.vmem [shape: f32[16,128], index: 0, kind: input, shape index: {}]   ;;  %s277_s1 = inlined_call_operand.vmem [shape: bf16[128,128], index: 1, kind: input, shape index: {}]   ;;  %s278_s2 = inlined_call_operand.vmem [shape: f32[1,128], index: 2, kind: input, shape index: {}]   ;;  %s279_s3 = inlined_call_operand.vmem [shape: f32[16,128], index: 3, kind: output, shape index: {}]  }
   0x1   :  { %v15_v0 = vld [vmem:[%s276_s0] sm:$0xff]  ;;  %v16_v1 = vld [vmem:[%s276_s0 + $0x8] sm:$0xff]  ;;  %181 = vmatprep.subr.bf16.mxu0 %v215_v2  ;;  %v205_v17 = vld [vmem:[%s277_s1 + $0x10] sm:$0xff]   ;;  %197 = vmatprep.mubr.msk.bf16.mxu0 %vm216_vm1, %v215_v2 }
   0x2   :  { %17 = vadd.xlane.f32.xlu0 %v15_v0  ;;  %v203_v3 = vld [vmem:[%s277_s1] sm:$0xff]   ;;  %v204_v4 = vld [vmem:[%s277_s1 + $0x8] sm:$0xff]   ;;  %v26_v6 = vand.u32 127, %v25_v5  ;;  %v206_v18 = vld [vmem:[%s277_s1 + $0x18] sm:$0xff]  }
   0x3   :  { %182 = vmatpush3.bf16.msra.mxu0 %v203_v3  ;;  %v207_v19 = vld [vmem:[%s277_s1 + $0x20] sm:$0xff]   ;;  %v208_v20 = vld [vmem:[%s277_s1 + $0x28] sm:$0xff]   ;;  %v209_v21 = vld [vmem:[%s277_s1 + $0x30] sm:$0xff]  }
   0x4   :  { %183 = vmatprep.subr.bf16.mxu0 %v215_v2  ;;  %vm27_vm0 = vcmp.lt.s32.totalorder %v26_v6, 32  ;;  %v210_v22 = vld [vmem:[%s277_s1 + $0x38] sm:$0xff]   ;;  %v163_v34 = vld [vmem:[%s278_s2] ss:$0 sm:$0xff] }
   0x6   :  { %19 = vadd.xlane.f32.xlu0 %v16_v1 }
   0x7   :  { %184 = vmatpush3.bf16.msra.mxu0 %v204_v4 }
   0x8   :  { %185 = vmatprep.subr.bf16.mxu0 %v215_v2 }
   0xb   :  { %186 = vmatpush3.bf16.msra.mxu0 %v205_v17 }
   0xc   :  { %187 = vmatprep.subr.bf16.mxu0 %v215_v2 }
   0xf   :  { %188 = vmatpush3.bf16.msra.mxu0 %v206_v18 }
  0x10   :  { %189 = vmatprep.subr.bf16.mxu0 %v215_v2 }
  0x13   :  { %190 = vmatpush3.bf16.msra.mxu0 %v207_v19 }
  0x14   :  { %191 = vmatprep.subr.bf16.mxu0 %v215_v2 }
  0x17   :  { %192 = vmatpush3.bf16.msra.mxu0 %v208_v20 }
  0x18   :  { %193 = vmatprep.subr.bf16.mxu0 %v215_v2 }
  0x1b   :  { %194 = vmatpush3.bf16.msra.mxu0 %v209_v21 }
  0x1c   :  { %195 = vmatprep.subr.bf16.mxu0 %v215_v2 }
  0x1f   :  { %196 = vmatpush3.bf16.msra.mxu0 %v210_v22 }
  0x8f   :  { %v18_v7 = vpop.xlane.xlu0 %17 }
  0x90   :  { %v21_v8 = vmul.f32 0.03125, %v18_v7 }
  0x92   :  { %v23_v9 = vsub.f32 %v15_v0, %v21_v8 }
  0x93   :  { %v20_v10 = vpop.xlane.xlu0 %19 }
  0x94   :  { %v22_v11 = vmul.f32 0.03125, %v20_v10  ;;  %v28_v12 = vsel %vm27_vm0, %v23_v9, 0.0 }
  0x95   :  { %v30_v13 = vmul.f32 %v28_v12, %v28_v12 }
  0x96   :  { %v24_v14 = vsub.f32 %v16_v1, %v22_v11 }
  0x97   :  { %32 = vadd.xlane.f32.xlu1 %v30_v13 }
  0x98   :  { %v29_v15 = vsel %vm27_vm0, %v24_v14, 0.0 }
  0x99   :  { %v31_v16 = vmul.f32 %v29_v15, %v29_v15 }
  0x9b   :  { %34 = vadd.xlane.f32.xlu1 %v31_v16 }
 0x124   :  { %v33_v23 = vpop.xlane.xlu1 %32 }
 0x125   :  { %v36_v24 = vmul.f32 0.03125, %v33_v23 }
 0x127   :  { %v38_v25 = vadd.f32 1e-05, %v36_v24 }
 0x128   :  { %v35_v26 = vpop.xlane.xlu1 %34 }
 0x129   :  { %v37_v27 = vmul.f32 0.03125, %v35_v26  ;;  %211 = vrsqrt.f32 %v38_v25 }
 0x12b   :  { %v39_v28 = vadd.f32 1e-05, %v37_v27 }
 0x12d   :  { %213 = vrsqrt.f32 %v39_v28 }
 0x133   :  { %v212_v29 = vpop.eup %211 }
 0x134   :  { %v42_v31 = vmul.f32 %v212_v29, %v28_v12 }
 0x137   :  { %v214_v30 = vpop.eup %213 }
 0x138   :  { %v43_v32 = vmul.f32 %v214_v30, %v29_v15 }
 0x13a   :  { %v44_v33 = vpack.c.bf16 %v43_v32, %v42_v31 }
 0x13c   :  { %198 = vmatmul.mubr.bf16.vlgmr.msra.gmra.mrb[0].mxu0 %v44_v33 }
 0x20f   :  { %v150_v35 = vpop.f32.mrb[0].mxu0 }
 0x210   :  { %v151_v36 = vadd.f32 %v163_v34, %v150_v35  ;;  %v199_v37 = vpop.f32.mrb[1].mxu0 }
 0x211   :  { %v153_v38 = vpop.f32.mrb[2].mxu0 }
 0x212   :  { %157 = vst [vmem:[%s279_s3] sm:$0xff] %v151_v36  ;;  %v154_v39 = vadd.f32 %v163_v34, %v153_v38  ;;  %v200_v40 = vpop.f32.mrb[3].mxu0 }
 0x214   :  { %158 = vst [vmem:[%s279_s3 + $0x8] sm:$0xff] %v154_v39 }

</bundles_post_ra>
